<compile_context>
chip_gen: v6e
topology: v6e:2x2x1
jax: 0.10.0
libtpu: 0.0.40
codegen_flags: <defaults>
</compile_context>

<pallas_src>
import jax
import jax.numpy as jnp
from jax.experimental import pallas as pl
from jax.experimental.pallas import tpu as pltpu


def _projection_kernel(f_ref, w1a_ref, w1b_ref, b1_ref, a_ref, bt_ref):
    # f_ref:   (tN, H)   features tile for this (node-block, batch) step
    # w1a_ref: (H, H)    first Linear weight acting on f_i   (resident)
    # w1b_ref: (H, H)    first Linear weight acting on f_j   (resident)
    # b1_ref:  (1, H)
    # a_ref:   (tN, H)   f @ W1a + b1   (bias folded once per row)
    # bt_ref:  (H, tN)   (f @ W1b)^T    (j on the lane axis for pass 2)
    f = f_ref[...]
    a_ref[...] = (jnp.dot(f, w1a_ref[...], preferred_element_type=jnp.float32)
                  + b1_ref[...])
    bt_ref[...] = jnp.dot(f, w1b_ref[...],
                          preferred_element_type=jnp.float32).T


def _pair_kernel(tile_any_ref, a_ref, bt_ref, adj_ref, w2_ref, b2_ref, o_ref):
    # tile_any_ref: SMEM (nI*nJ,) int32 -- 1 if (i, j) tile has any edge
    # a_ref:   (tI, H)    projected i-rows (bias already folded)
    # bt_ref:  (H, tJ)    projected j-rows, transposed (j lane-minor)
    # adj_ref: (tI, tJ)   int8 causal-graph mask tile
    # w2_ref:  SMEM (H,)  second Linear weight
    # b2_ref:  SMEM (1,)  second Linear bias
    # o_ref:   (tI, tJ)
    i = pl.program_id(0)
    j = pl.program_id(1)
    n_j = pl.num_programs(1)
    has_edge = tile_any_ref[i * n_j + j] != 0

    t_i, h_dim = a_ref.shape
    t_j = bt_ref.shape[1]

    @pl.when(has_edge)
    def _():
        # Accumulate the (tI, tJ) score tile directly -- never materializes
        # the (tI, H, tJ) hidden tensor.  Each step: outer-sum broadcast add,
        # relu, scale by the SMEM scalar w2[h], accumulate.
        acc = jnp.zeros((t_i, t_j), jnp.float32)
        for h in range(h_dim):  # H is a compile-time constant -> static unroll
            x = a_ref[:, h:h + 1] + bt_ref[h:h + 1, :]        # (tI,1)+(1,tJ)
            acc = acc + w2_ref[h] * jnp.maximum(x, 0.0)
        score = acc + b2_ref[0]
        o_ref[...] = jnp.where(adj_ref[...] != 0,
                               jax.nn.sigmoid(score),
                               jnp.zeros((t_i, t_j), jnp.float32))

    @pl.when(jnp.logical_not(has_edge))
    def _():
        o_ref[...] = jnp.zeros((t_i, t_j), jnp.float32)


def causal_weighting(features, adj_mask, w1, b1, w2, b2):
    """features: (B, N, H) f32, adj_mask: (N, N) {0,1}.
    w1: (2H, H), b1: (H,), w2: (H,), b2: scalar (weights stored (in, out) so
    the forward is x @ w + b)."""
    B, N, H = features.shape
    w1a = w1[:H, :].astype(jnp.float32)          # acts on f_i
    w1b = w1[H:, :].astype(jnp.float32)          # acts on f_j
    b1_2d = b1.reshape(1, H).astype(jnp.float32)
    w2_1d = w2.reshape(H).astype(jnp.float32)
    b2_1d = jnp.asarray(b2, jnp.float32).reshape(1)
    adj_i8 = (adj_mask != 0).astype(jnp.int8)    # 4x less HBM than f32

    # ---- pass 1: per-node projections, tiled over N ----
    tile_n = N if N <= 256 else 256
    n_t = pl.cdiv(N, tile_n)

    a_proj, bt_proj = pl.pallas_call(
        _projection_kernel,
        out_shape=(jax.ShapeDtypeStruct((B, N, H), jnp.float32),
                   jax.ShapeDtypeStruct((B, H, N), jnp.float32)),
        grid_spec=pltpu.PrefetchScalarGridSpec(
            num_scalar_prefetch=0,
            grid=(n_t, B),
            in_specs=[
                pl.BlockSpec((None, tile_n, H), lambda t, b: (b, t, 0)),
                pl.BlockSpec((H, H), lambda t, b: (0, 0)),      # W1a resident
                pl.BlockSpec((H, H), lambda t, b: (0, 0)),      # W1b resident
                pl.BlockSpec((1, H), lambda t, b: (0, 0)),      # b1  resident
            ],
            out_specs=(
                pl.BlockSpec((None, tile_n, H), lambda t, b: (b, t, 0)),
                pl.BlockSpec((None, H, tile_n), lambda t, b: (b, 0, t)),
            ),
        ),
        compiler_params=pltpu.CompilerParams(
            dimension_semantics=("parallel", "parallel"),
            vmem_limit_bytes=32 * 1024 * 1024),
    )(features.astype(jnp.float32), w1a, w1b, b1_2d)

    # ---- pass 2: tiled (i, j) pair grid ----
    # 128x128 f32 accumulator = 16 vregs; per-step working set (acc + two
    # broadcast operands + temps) stays well inside the 64-vreg file on all
    # generations, and the per-step VMEM tiles stay far below v7x's 64 MiB.
    tile_i = N if N <= 128 else 128
    tile_j = N if N <= 128 else 128
    n_i = pl.cdiv(N, tile_i)
    n_j = pl.cdiv(N, tile_j)

    # Per-tile "any edge" table (scalar prefetch) -> skip fully-masked tiles.
    pad_i = n_i * tile_i - N
    pad_j = n_j * tile_j - N
    adj_pad = jnp.pad(adj_i8, ((0, pad_i), (0, pad_j)))
    tile_any = (adj_pad.reshape(n_i, tile_i, n_j, tile_j).max(axis=(1, 3)) > 0)
    tile_any = tile_any.astype(jnp.int32).reshape(-1)

    return pl.pallas_call(
        _pair_kernel,
        out_shape=jax.ShapeDtypeStruct((B, N, N), jnp.float32),
        grid_spec=pltpu.PrefetchScalarGridSpec(
            num_scalar_prefetch=1,
            grid=(n_i, n_j, B),   # batch innermost: adj tile stays resident
            in_specs=[
                pl.BlockSpec((None, tile_i, H), lambda i, j, b, t: (b, i, 0)),
                pl.BlockSpec((None, H, tile_j), lambda i, j, b, t: (b, 0, j)),
                pl.BlockSpec((tile_i, tile_j), lambda i, j, b, t: (i, j)),
                pl.BlockSpec(memory_space=pltpu.MemorySpace.SMEM),   # w2
                pl.BlockSpec(memory_space=pltpu.MemorySpace.SMEM),   # b2
            ],
            out_specs=pl.BlockSpec((None, tile_i, tile_j),
                                   lambda i, j, b, t: (b, i, j)),
        ),
        compiler_params=pltpu.CompilerParams(
            dimension_semantics=("parallel", "parallel", "arbitrary"),
            vmem_limit_bytes=32 * 1024 * 1024),
    )(tile_any, a_proj, bt_proj, adj_i8, w2_1d, b2_1d)


def reference(features, adj_mask, w1, b1, w2, b2):
    """Pure-JAX reference reproducing the PyTorch double loop."""
    B, N, H = features.shape
    fi = jnp.broadcast_to(features[:, :, None, :], (B, N, N, H))
    fj = jnp.broadcast_to(features[:, None, :, :], (B, N, N, H))
    pair = jnp.concatenate([fi, fj], axis=-1)                 # (B, N, N, 2H)
    h = jnp.maximum(pair @ w1 + b1, 0.0)                      # (B, N, N, H)
    s = jax.nn.sigmoid(h @ w2 + b2)                           # (B, N, N)
    return s * adj_mask[None, :, :]


if __name__ == "__main__":
    B, N, H = 2, 8, 32   # batch, num_nodes, hidden_dim

    key = jax.random.PRNGKey(0)
    kf, kw1, kb1, kw2, kb2 = jax.random.split(key, 5)

    features = jax.random.normal(kf, (B, N, H), dtype=jnp.float32)

    # weight_net params (nn.Linear(2H,H), nn.Linear(H,1)) stored as (in, out).
    w1 = jax.random.normal(kw1, (2 * H, H), dtype=jnp.float32) * 0.1
    b1 = jax.random.normal(kb1, (H,), dtype=jnp.float32) * 0.1
    w2 = jax.random.normal(kw2, (H,), dtype=jnp.float32) * 0.1
    b2 = jax.random.normal(kb2, (), dtype=jnp.float32) * 0.1

    # Deterministic synthetic causal DAG: edge i -> j iff i < j.
    ii = jnp.arange(N)[:, None]
    jj = jnp.arange(N)[None, :]
    adj_mask = (ii < jj).astype(jnp.float32)                  # (N, N)

    out = causal_weighting(features, adj_mask, w1, b1, w2, b2)
    out = jax.block_until_ready(out)

    ref = reference(features, adj_mask, w1, b1, w2, b2)
    assert out.shape == (B, N, N)
    assert jnp.allclose(out, ref, atol=1e-5, rtol=1e-5), "mismatch vs reference"

    print("KERNEL_OK")
</pallas_src>

<mosaic_0001>
module attributes {stable_mosaic.version = 11 : i64} {
  func.func @_projection_kernel(%arg0: i32, %arg1: i32, %arg2: memref<1x8x32xf32, #tpu.memory_space<vmem>>, %arg3: memref<32x32xf32, #tpu.memory_space<vmem>>, %arg4: memref<32x32xf32, #tpu.memory_space<vmem>>, %arg5: memref<1x32xf32, #tpu.memory_space<vmem>>, %arg6: memref<1x8x32xf32, #tpu.memory_space<vmem>>, %arg7: memref<1x32x8xf32, #tpu.memory_space<vmem>>) attributes {dimension_semantics = [#tpu.dimension_semantics<parallel>, #tpu.dimension_semantics<parallel>], iteration_bounds = array<i64: 1, 2>, scalar_prefetch = 0 : i64, scratch_operands = 0 : i64, tpu.core_type = #tpu.core_type<tc>, window_params = [{transform_indices = @transform_0, window_bounds = array<i64: 1, 8, 32>}, {pipeline_mode = #tpu.pipeline_mode<synchronous>, transform_indices = @transform_1, window_bounds = array<i64: 32, 32>}, {pipeline_mode = #tpu.pipeline_mode<synchronous>, transform_indices = @transform_2, window_bounds = array<i64: 32, 32>}, {pipeline_mode = #tpu.pipeline_mode<synchronous>, transform_indices = @transform_3, window_bounds = array<i64: 1, 32>}, {transform_indices = @transform_4, window_bounds = array<i64: 1, 8, 32>}, {transform_indices = @transform_5, window_bounds = array<i64: 1, 32, 8>}]} {
    %c0 = arith.constant 0 : index
    %c0_0 = arith.constant 0 : index
    %c0_1 = arith.constant 0 : index
    %0 = vector.load %arg2[%c0, %c0_0, %c0_1] : memref<1x8x32xf32, #tpu.memory_space<vmem>>, vector<1x8x32xf32>
    %1 = vector.shape_cast %0 : vector<1x8x32xf32> to vector<8x32xf32>
    %c0_2 = arith.constant 0 : index
    %c0_3 = arith.constant 0 : index
    %2 = vector.load %arg3[%c0_2, %c0_3] : memref<32x32xf32, #tpu.memory_space<vmem>>, vector<32x32xf32>
    %cst = arith.constant dense<0.000000e+00> : vector<8x32xf32>
    %3 = tpu.matmul %1, %2, %cst {dimension_numbers = #tpu.dot_dimension_numbers<[1], [0], [0], [1], [0, 0, 1, 1], [], []>} : vector<8x32xf32>, vector<32x32xf32>, vector<8x32xf32> -> vector<8x32xf32>
    %c0_4 = arith.constant 0 : index
    %c0_5 = arith.constant 0 : index
    %4 = vector.load %arg5[%c0_4, %c0_5] : memref<1x32xf32, #tpu.memory_space<vmem>>, vector<1x32xf32>
    %5 = vector.broadcast %4 : vector<1x32xf32> to vector<8x32xf32>
    %6 = arith.addf %3, %5 : vector<8x32xf32>
    %c0_6 = arith.constant 0 : index
    %c0_7 = arith.constant 0 : index
    %c0_8 = arith.constant 0 : index
    %7 = vector.load %arg6[%c0_6, %c0_7, %c0_8] : memref<1x8x32xf32, #tpu.memory_space<vmem>>, vector<1x8x32xf32>
    %8 = vector.shape_cast %7 : vector<1x8x32xf32> to vector<8x32xf32>
    %9 = vector.shape_cast %6 : vector<8x32xf32> to vector<1x8x32xf32>
    tpu.vector_store %arg6[%c0_6, %c0_7, %c0_8], %9 {strides = array<i32>} : memref<1x8x32xf32, #tpu.memory_space<vmem>>, vector<1x8x32xf32>,
    %c0_9 = arith.constant 0 : index
    %c0_10 = arith.constant 0 : index
    %10 = vector.load %arg4[%c0_9, %c0_10] : memref<32x32xf32, #tpu.memory_space<vmem>>, vector<32x32xf32>
    %cst_11 = arith.constant dense<0.000000e+00> : vector<8x32xf32>
    %11 = tpu.matmul %1, %10, %cst_11 {dimension_numbers = #tpu.dot_dimension_numbers<[1], [0], [0], [1], [0, 0, 1, 1], [], []>} : vector<8x32xf32>, vector<32x32xf32>, vector<8x32xf32> -> vector<8x32xf32>
    %12 = tpu.transpose %11, [1, 0] : vector<8x32xf32> -> vector<32x8xf32>
    %c0_12 = arith.constant 0 : index
    %c0_13 = arith.constant 0 : index
    %c0_14 = arith.constant 0 : index
    %13 = vector.load %arg7[%c0_12, %c0_13, %c0_14] : memref<1x32x8xf32, #tpu.memory_space<vmem>>, vector<1x32x8xf32>
    %14 = vector.shape_cast %13 : vector<1x32x8xf32> to vector<32x8xf32>
    %15 = vector.shape_cast %12 : vector<32x8xf32> to vector<1x32x8xf32>
    tpu.vector_store %arg7[%c0_12, %c0_13, %c0_14], %15 {strides = array<i32>} : memref<1x32x8xf32, #tpu.memory_space<vmem>>, vector<1x32x8xf32>,
    return
  }
  func.func @transform_0(%arg0: i32, %arg1: i32) -> (i32, i32, i32) {
    %c0_i32 = arith.constant 0 : i32
    %c0_i32_0 = arith.constant 0 : i32
    return %arg1, %arg0, %c0_i32 : i32, i32, i32
  }
  func.func @transform_1(%arg0: i32, %arg1: i32) -> (i32, i32) {
    %c0_i32 = arith.constant 0 : i32
    %c0_i32_0 = arith.constant 0 : i32
    %c0_i32_1 = arith.constant 0 : i32
    return %c0_i32, %c0_i32_0 : i32, i32
  }
  func.func @transform_2(%arg0: i32, %arg1: i32) -> (i32, i32) {
    %c0_i32 = arith.constant 0 : i32
    %c0_i32_0 = arith.constant 0 : i32
    %c0_i32_1 = arith.constant 0 : i32
    return %c0_i32, %c0_i32_0 : i32, i32
  }
  func.func @transform_3(%arg0: i32, %arg1: i32) -> (i32, i32) {
    %c0_i32 = arith.constant 0 : i32
    %c0_i32_0 = arith.constant 0 : i32
    %c0_i32_1 = arith.constant 0 : i32
    return %c0_i32, %c0_i32_0 : i32, i32
  }
  func.func @transform_4(%arg0: i32, %arg1: i32) -> (i32, i32, i32) {
    %c0_i32 = arith.constant 0 : i32
    %c0_i32_0 = arith.constant 0 : i32
    return %arg1, %arg0, %c0_i32 : i32, i32, i32
  }
  func.func @transform_5(%arg0: i32, %arg1: i32) -> (i32, i32, i32) {
    %c0_i32 = arith.constant 0 : i32
    %c0_i32_0 = arith.constant 0 : i32
    return %arg1, %c0_i32, %arg0 : i32, i32, i32
  }
}

</mosaic_0001>

<bundles_post_ra>
// kernel: tpu_custom_call.1
= control target key start
LH: loop header
LB: loop body
LE: loop exit
PB: predicated region body
PF: predicated region fallthrough
CT: control target
= control target key end

     0   :  { %s1201_s0 = inlined_call_operand.hbm [shape: f32[2,8,32], index: 0, kind: input, shape index: {}]   ;;  %s1202_s1 = inlined_call_operand.hbm [shape: f32[32,32], index: 1, kind: input, shape index: {}]   ;;  %s1203_s2 = inlined_call_operand.hbm [shape: f32[32,32], index: 2, kind: input, shape index: {}]   ;;  %s1204_s3 = inlined_call_operand.vmem [shape: f32[1,32], index: 3, kind: input, shape index: {}]   ;;  %s1205_s4 = inlined_call_operand.hbm [shape: f32[2,8,32], index: 4, kind: output, shape index: {0}]   ;;  %s1206_s5 = inlined_call_operand.vmem [shape: f32[2,32,8], index: 5, kind: output, shape index: {1}]  }
   0x1   :  { %1210 = sst [smem:[#allocation12_spill]] %s1202_s1 }
   0x2   :  { %11 = vsyncpa [#allocation3], 0 }
   0x3   :  { %13 = vsyncpa [#allocation3 + $0x1], 0 }
   0x4   :  { %14 = vsyncpa [#allocation6], 0 }
   0x5   :  { %15 = vsyncpa [#allocation4], 0 }
   0x6   :  { %17 = vsyncpa [#allocation4 + $0x1], 0  ;;  %s1012_s18 = smov 0   ;;  %s1014_s19 = smov 0  }
   0x7   :  { %s1016_s20 = smov 0   ;;  %s1018_s21 = smov 0  }
   0x8   :  { %s1020_s22 = smov 0   ;;  %s1022_s23 = smov 0  }
   0x9 LB: > { %s666_s24 = sadd.s32 4294967295, %s972_s23   ;;  %s667_s25 = sadd.s32 4294967294, %s972_s23   ;;  %s972_s23 = sphi %s1022_s23, %s23_s23   ;;  %s968_s22 = sphi %s1020_s22, %s1228_s22   ;;  %s964_s21 = sphi %s1018_s21, %s1227_s21   ;;  %s960_s20 = sphi %s1016_s20, %s1226_s20   ;;  %s956_s19 = sphi %s1014_s19, %s1225_s19   ;;  %s952_s18 = sphi %s1012_s18, %s1224_s18  }
   0xa   : > { %p57_p0 = scmp.ne.s32.totalorder %s956_s19, %s952_s18  ;;  %p1046_p1 = scmp.eq.s32.totalorder %s666_s24, 0 }
   0xb   : > { %p1050_p2 = scmp.eq.s32.totalorder %s666_s24, 1  ;;  %p152_p3 = scmp.eq.s32.totalorder %s667_s25, 1 }
   0xc   : > { %s1211_s26 = scalar_select %p1046_p1, 1, 0 }
   0xd   : > { %p1056_p4 = por %p1046_p1, %p57_p0  ;;  %p668_p5 = scmp.ge.s32.totalorder %s972_s23, 1 }
   0xe   : > { %p1061_p6 = por %p152_p3, %p57_p0  ;;  %p187_p7 = scmp.lt.s32.totalorder %s972_s23, 3 }
   0xf   : > { %s1213_s28 = scalar_select %p1056_p4, 1, 0 }
  0x10   : > { %s1214_s29 = scalar_select %p1061_p6, 1, 0 }
  0x11   : > { %p1066_p8 = pnand %p668_p5, %p187_p7  ;;  %s974_s6 = smov [#allocation5]  }
  0x12   : > { %s199_s7 = sshll.u32 %s974_s6, 4  ;;  %s975_s9 = smov [#allocation7]   ;;  %s200_s7 = int_to_ptr.vmem [resolvable:$true] %s199_s7 }
  0x13   : > { %p733_p9 = pneg %p1066_p8  ;;  %s212_s10 = sshll.u32 %s975_s9, 4  ;;  %s213_s10 = int_to_ptr.vmem [resolvable:$true] %s212_s10 }
  0x14   : > { %s819_s11 = scalar_lea.vmem %s200_s7, 512  ;;  %p827_p5 = scmp.lt.s32.totalorder %s200_s7, %s200_s7 }
  0x15   : > { %p1075_p11 = pnand %p733_p9, %p1046_p1  ;;  %p820_p13 = scmp.ne.s32.totalorder %s200_s7, %s819_s11 }
  0x16   : > { %p828_p7 = scmp.lt.s32.totalorder %s819_s11, %s819_s11 }
  0x17   : > { %p810_p12 = pneg %p1075_p11 }
  0x18   : > { %p829_p10 = por %p828_p7, %p827_p5 }
  0x19   : > { %p822_p0 = pnand %p820_p13, %p810_p12 }
  0x1b   : > { %p823_p3 = pneg %p822_p0 }
  0x1d   : > { %p830_p9 = pnand %p829_p10, %p823_p3 }
  0x1f   : > { %833 = shalt.err (!%p830_p9)
}
  0x20   : > { %s976_s12 = smov 128   ;;  %s977_s13 = smov 8  }
  0x21   : > { %s1217_s1 = sld [smem:[#allocation12_spill]]  ;;  %s845_s16 = scalar_lea.vmem %s213_s10, 512 }
  0x22   : > { %p846_p6 = scmp.ne.s32.totalorder %s213_s10, %s845_s16  ;;  %p853_p1 = scmp.lt.s32.totalorder %s213_s10, %s213_s10 }
  0x23   : > { %p854_p4 = scmp.lt.s32.totalorder %s845_s16, %s845_s16 }
  0x24   : > { %p848_p13 = pnand %p846_p6, %p810_p12 }
  0x25   : > { %p855_p5 = por %p854_p4, %p853_p1 }
  0x26   : > { %p849_p0 = pneg %p848_p13 }
  0x27   : > { %736 = dma.hbm_to_vmem [thread:$0]  (!%p1075_p11), %s1217_s1, 512, %s200_s7, [#allocation6], %s976_s12, %s976_s12, %s977_s13  }
  0x28   : > { %p856_p10 = pnand %p855_p5, %p849_p0 }
  0x2a   : > { %859 = shalt.err (!%p856_p10)
}
  0x2b   : > { %739 = dma.hbm_to_vmem [thread:$0]  (!%p1075_p11), %s1203_s2, 512, %s213_s10, [#allocation6], %s976_s12, %s976_s12, %s977_s13  }
  0x2c   : > { %s32_s25 = sadd.s32 1, %s968_s22  ;;  %s44_s6 = sadd.s32 1, %s960_s20 }
  0x2d   : > { %p33_p1 = scmp.ge.s32.totalorder %s32_s25, 2  ;;  %p51_p4 = scmp.ne.s32.totalorder %s960_s20, %s956_s19 }
  0x2e   : > { %p52_p6 = scmp.eq.s32.totalorder %s972_s23, 0  ;;  %p750_p12 = scmp.lt.s32.totalorder %s972_s23, 2 }
  0x2f   : > { %s1230_s25 = smov (%p33_p1, %s32_s25), 0  ;;  %p1107_p7 = por %p1050_p2, %p51_p4 }
  0x30   : > { %p53_p3 = por %p52_p6, %p51_p4  ;;  %s39_s8 = ssub.s32 %s968_s22, %s1230_s25 }
  0x31   : > { %s229_s9 = sand.u32 1, %s960_s20   ;;  %p42_p9 = scmp.eq.s32.totalorder %s39_s8, 0 }
  0x32   : > { %s672_s10 = sshll.u32 %s229_s9, 3  ;;  %s673_s11 = sshll.u32 %s968_s22, 7 }
  0x33   : > { %s1116_s12 = scalar_select %p42_p9, %s960_s20, %s44_s6  }
  0x34   : > { %s239_s15 = scalar_lea.hbm %s1201_s0, %s673_s11  ;;  %s233_s16 = scalar_lea.vmem [#allocation2], %s672_s10 }
  0x35   : > { %s241_s17 = sshll.u32 %s233_s16, 4  ;;  %p1123_p11 = pnand %p750_p12, %p53_p3  ;;  %s242_s17 = int_to_ptr.vmem [resolvable:$true] %s241_s17 }
  0x36   : > { %s230_s24 = scalar_lea.sflag [#allocation3], %s229_s9  ;;  %s873_s8 = scalar_lea.vmem %s242_s17, 128 }
  0x37   : > { %p862_p2 = pneg %p1123_p11  ;;  %p874_p13 = scmp.ne.s32.totalorder %s242_s17, %s873_s8 }
  0x38   : > { %s978_s6 = smov [#allocation2]  }
  0x39   : > { %p876_p0 = pnand %p874_p13, %p862_p2  ;;  %s878_s1 = sshll.u32 %s978_s6, 4  ;;  %s879_s1 = int_to_ptr.vmem [resolvable:$false] %s878_s1 }
  0x3a   : > { %s880_s11 = scalar_lea.vmem %s879_s1, 256  ;;  %p881_p10 = scmp.lt.s32.totalorder %s242_s17, %s879_s1 }
  0x3b   : > { %p877_p5 = pneg %p876_p0  ;;  %p882_p1 = scmp.lt.s32.totalorder %s880_s11, %s873_s8 }
  0x3d   : > { %p883_p4 = por %p882_p1, %p881_p10 }
  0x3f   : > { %p884_p6 = pnand %p883_p4, %p877_p5 }
  0x41   : > { %887 = shalt.err (!%p884_p6)
}
  0x42   : > { %743 = dma.hbm_to_vmem [thread:$0]  (!%p1123_p11), %s239_s15, 128, %s242_s17, %s230_s24  }
  0x43   : > { %250 = sbr.rel (%p1066_p8) target bundleno = 417 (0x1a1), region = 36  ;;  %s1134_s9 = sand.u32 (!%p1066_p8), 1, %s956_s19  }
  0x44   : > { %s675_s10 = sshll.u32 (!%p1066_p8), %s1134_s9, 3  ;;  %s253_s13 = scalar_lea.sflag (!%p1066_p8), [#allocation3], %s1134_s9 }
  0x45   : > { %s256_s1 = scalar_lea.vmem (!%p1066_p8), [#allocation2], %s675_s10  ;;  %p1220_p12 = scmp.ne.s32.totalorder (!%p1066_p8), %s1213_s28, 0 }
  0x48   : > { %939 = dma.done.wait (%p1220_p12), %s253_s13, 128  }
  0x49   : > { %941 = vsyncadd (%p1220_p12), %s253_s13, 4294967168  ;;  %p1221_p3 = scmp.ne.s32.totalorder %s1211_s26, 0 }
  0x4b   : > { %943 = dma.done.wait (%p1221_p3), [#allocation6], 1024  }
  0x4c   : > { %945 = vsyncadd (%p1221_p3), [#allocation6], 4294966272  ;;  %v979_v0 = vmov 0.0   ;;  %vm980_vm0 = vmmov 0   ;;  %v397_v1 = vld [vmem:[#allocation7 + $0x18] sm:$0xff]  ;;  %v396_v2 = vld [vmem:[#allocation7 + $0x10] sm:$0xff] }
  0x4d   : > { %710 = vmatprep.subr.mxu1 %v979_v0  ;;  %718 = vmatprep.mubr.msk.f32.mxu1 %vm980_vm0, %v979_v0  ;;  %v311_v3 = vld [vmem:[#allocation5 + $0x18] sm:$0xff]  ;;  %v395_v4 = vld [vmem:[#allocation7 + $0x8] sm:$0xff]  ;;  %v310_v5 = vld [vmem:[#allocation5 + $0x10] sm:$0xff]  ;;  %vm319_vm1 = vcmask 261120   ;;  %s288_s30 = scalar_lea.vmem [#allocation8], %s675_s10  ;;  %s685_s14 = sshll.u32 %s964_s21, 7 }
  0x4e   : > { %699 = vmatprep.subr.mxu0 %v979_v0  ;;  %707 = vmatprep.mubr.msk.f32.mxu0 %vm980_vm0, %v979_v0  ;;  %v309_v6 = vld [vmem:[#allocation5 + $0x8] sm:$0xff]  ;;  %v394_v7 = vld [vmem:[#allocation7] sm:$0xff]  ;;  %v307_v8 = vld [vmem:[%s256_s1] sm:$0xff]  ;;  %s528_s15 = sshll.u32 %s288_s30, 4  ;;  %s526_s27 = scalar_lea.hbm %s1205_s4, %s685_s14  ;;  %s529_s15 = int_to_ptr.vmem [resolvable:$true] %s528_s15 }
  0x4f   : > { %711 = vmatpush3.msra.mxu1 %v397_v1  ;;  %700 = vmatpush3.msra.mxu0 %v311_v3  ;;  %v308_v9 = vld [vmem:[#allocation5] sm:$0xff]  ;;  %v681_v12 = vld [vmem:[%s1204_s3] ss:$0 sm:$0xff]  ;;  %s506_s24 = scalar_lea.sflag [#allocation4], %s1134_s9  ;;  %s888_s8 = scalar_lea.vmem %s529_s15, 128 }
  0x50   : > { %712 = vmatprep.subr.mxu1 %v979_v0  ;;  %701 = vmatprep.subr.mxu0 %v979_v0  ;;  %p889_p8 = scmp.ne.s32.totalorder %s529_s15, %s888_s8  ;;  %s981_s6 = smov [#allocation8]  }
  0x51   : > { %713 = vmatpush3.msra.mxu1 %v396_v2  ;;  %702 = vmatpush3.msra.mxu0 %v310_v5  ;;  %s892_s11 = sshll.u32 %s981_s6, 4  ;;  %s893_s11 = int_to_ptr.vmem [resolvable:$false] %s892_s11 }
  0x52   : > { %714 = vmatprep.subr.mxu1 %v979_v0  ;;  %703 = vmatprep.subr.mxu0 %v979_v0  ;;  %p890_p9 = pnand %p889_p8, %p1107_p7  ;;  %s894_s13 = scalar_lea.vmem %s893_s11, 256 }
  0x53   : > { %715 = vmatpush3.msra.mxu1 %v395_v4  ;;  %704 = vmatpush3.msra.mxu0 %v309_v6  ;;  %p895_p2 = scmp.lt.s32.totalorder %s529_s15, %s893_s11  ;;  %p896_p13 = scmp.lt.s32.totalorder %s894_s13, %s888_s8 }
  0x54   : > { %716 = vmatprep.subr.mxu1 %v979_v0  ;;  %705 = vmatprep.subr.mxu0 %v979_v0  ;;  %p891_p11 = pneg %p890_p9 }
  0x55   : > { %717 = vmatpush3.msra.mxu1 %v394_v7  ;;  %706 = vmatpush3.msra.mxu0 %v308_v9  ;;  %p897_p0 = por %p896_p13, %p895_p2 }
  0x56   : > { %719 = vmatmul.mubr.msk.f32.vlgmr.msra.gmra.mxu1 %vm319_vm1, %v307_v8  ;;  %708 = vmatmul.mubr.msk.f32.vlgmr.msra.gmra.mxu0 %vm319_vm1, %v307_v8 }
  0x57   : > { %p898_p5 = pnand %p897_p0, %p891_p11 }
 0x116   : > { %v464_v10 = vpop.f32.mrf.mxu1  ;;  %v389_v13 = vpop.f32.mrf.mxu0 }
 0x117   : > { %468 = vxpose.xlu0.b32.start.end [1/1] (short) (narrow) %v464_v10, 32  ;;  %v390_v14 = vadd.f32 %v681_v12, %v389_v13 }
 0x118   : > { %v720_v11 = vpop.f32.mrf.mxu1  ;;  %v709_v15 = vpop.f32.mrf.mxu0 }
 0x119   : > { %393 = vst.msk [vmem:[%s288_s30] sm:$0xff] %vm319_vm1, %v390_v14 }
 0x11a   : > { %901 = shalt.err (!%p898_p5)
}
 0x11b   : > { %s902_s10 = scalar_lea.hbm %s526_s27, 128  ;;  %s906_s26 = scalar_lea.hbm %s1205_s4, 256 }
 0x11c   : > { %p903_p10 = scmp.ne.s32.totalorder %s526_s27, %s902_s10  ;;  %p907_p6 = scmp.lt.s32.totalorder %s526_s27, %s1205_s4 }
 0x11d   : > { %p908_p12 = scmp.lt.s32.totalorder %s906_s26, %s902_s10 }
 0x11e   : > { %p904_p1 = pnand %p903_p10, %p1107_p7 }
 0x11f   : > { %p909_p3 = por %p908_p12, %p907_p6 }
 0x120   : > { %p905_p4 = pneg %p904_p1 }
 0x122   : > { %p910_p8 = pnand %p909_p3, %p905_p4 }
 0x124   : > { %913 = shalt.err (!%p910_p8)
}
 0x125   : > { %731 = dma.vmem_to_hbm [thread:$0]  (%p1107_p7), %s529_s15, 128, %s526_s27, %s506_s24   ;;  %vm500_vm2 = vcmask 64512  }
 0x126   : > { %p299_p9 = scmp.lt.s32.totalorder %s964_s21, 1 }
 0x128   : > { %s1232_s21 = smov (!%p299_p9, %s964_s21), 1 }
 0x129   : > { %s688_s14 = sshll.u32 %s1232_s21, 5 }
 0x12a   : > { %s306_s8 = scalar_lea.vmem %s1206_s5, %s688_s14 }
 0x193   : > { %v484_v16 = vpop.trf.xlu0 }
 0x194   : > { %501 = vst.msk [vmem:[%s306_s8] sm:$0xff] %vm500_vm2, %v484_v16 }
 0x197   : > { %v485_v17 = vpop.trf.xlu0 }
 0x198   : > { %502 = vst.msk [vmem:[%s306_s8 + $0x8] sm:$0xff] %vm500_vm2, %v485_v17 }
 0x19b   : > { %v486_v18 = vpop.trf.xlu0 }
 0x19c   : > { %503 = vst.msk [vmem:[%s306_s8 + $0x10] sm:$0xff] %vm500_vm2, %v486_v18 }
 0x19f   : > { %v487_v19 = vpop.trf.xlu0 }
 0x1a0   : > { %504 = vst.msk [vmem:[%s306_s8 + $0x18] sm:$0xff] %vm500_vm2, %v487_v19 }
 0x1a1 PF: > { %s543_s7 = sand.u32 1, %s952_s18   ;;  %p1222_p7 = scmp.ne.s32.totalorder %s1214_s29, 0 }
 0x1a2   : > { %p1223_p11 = scmp.ge.s32.totalorder %s972_s23, 2  ;;  %s544_s21 = scalar_lea.sflag [#allocation4], %s543_s7 }
 0x1a4   : > { %p745_p2 = pnand %p1223_p11, %p1222_p7 }
 0x1a6   : > { %p746_p13 = pneg %p745_p2 }
 0x1a8   : > { %947 = dma.done.wait (%p746_p13), %s544_s21, 128  }
 0x1a9   : > { %949 = vsyncadd (%p746_p13), %s544_s21, 4294967168  ;;  %s23_s23 = sadd.s32 1, %s972_s23   ;;  %s1224_s18 = smov %s956_s19 }
 0x1aa   : > { %p20_p0 = scmp.ge.s32.totalorder %s23_s23, 4   ;;  %s1225_s19 = smov %s960_s20 }
 0x1ab   : > { %s1226_s20 = smov %s1116_s12  ;;  %s1227_s21 = smov %s968_s22 }
 0x1ac   : > { %s1228_s22 = smov %s1230_s25  ;;  %22 = sbr.rel (!%p20_p0) target bundleno = 9 (0x9), region = 101 }
 0x1b1   :  { %560 = vsyncpa [#allocation3], 1 }
 0x1b2   :  { %562 = vsyncpa [#allocation3 + $0x1], 1 }
 0x1b3   :  { %563 = vsyncpa [#allocation6], 1 }
 0x1b4   :  { %564 = vsyncpa [#allocation4], 1 }
 0x1b5   :  { %566 = vsyncpa [#allocation4 + $0x1], 1 }

</bundles_post_ra>
